<compile_context>
chip_gen: v5e
topology: v5e:2x2
jax: 0.10.0
libtpu: 0.0.40
codegen_flags: <defaults>
</compile_context>

<pallas_src>
import functools

import jax
import jax.numpy as jnp
import numpy as np
from jax import lax
from jax.experimental import pallas as pl
from jax.experimental.pallas import tpu as pltpu


def small_basic_block_kernel(x_ref, w1_ref, b1_ref, w2_ref, b2_ref,
                             w3_ref, b3_ref, w4_ref, b4_ref, o_ref, *, H, W):
    mid = w1_ref.shape[0]
    M = x_ref.shape[1]          # nb * H * W  (lane axis)
    HW = H * W

    # Per-image row / col position of every lane (computed once).  These masks
    # implement the zero padding AND guard image boundaries when several batch
    # images share the lane axis.
    lane = lax.broadcasted_iota(jnp.int32, (1, M), 1)
    pos = lane % HW             # flattened (h, w) position inside its image
    col = lane % W              # w position inside its row
    has_up = pos >= W           # a valid h-1 source row exists
    has_down = pos < HW - W     # a valid h+1 source row exists
    has_left = col >= 1         # a valid w-1 source col exists
    has_right = col < W - 1     # a valid w+1 source col exists

    def mxu(w_ref, a):
        # bf16 operands, f32 accumulation on the MXU.
        return jnp.dot(w_ref[...], a.astype(jnp.bfloat16),
                       preferred_element_type=jnp.float32)

    def shift(y, amount, valid):
        # out[i] = y[(i - amount) mod M], zeroed where the source is padding
        # or belongs to a different image.  Static lane rotate -> XLU slot.
        return jnp.where(valid, pltpu.roll(y, amount, axis=1), 0.0)

    # --- conv 1x1 + ReLU ----------------------------------------------------
    h = jnp.maximum(mxu(w1_ref, x_ref[...]) + b1_ref[...], 0.0)     # (mid, M)

    # --- conv (3,1), padding (1,0) + ReLU ------------------------------------
    # One matmul for all 3 taps: out[h] = Y0[h-1] + Y1[h] + Y2[h+1].
    y = mxu(w2_ref, h)                                              # (3*mid, M)
    h = jnp.maximum(shift(y[0:mid], W, has_up)
                    + y[mid:2 * mid]
                    + shift(y[2 * mid:3 * mid], M - W, has_down)
                    + b2_ref[...], 0.0)

    # --- conv (1,3), padding (0,1) + ReLU ------------------------------------
    # out[w] = Y0[w-1] + Y1[w] + Y2[w+1].
    y = mxu(w3_ref, h)                                              # (3*mid, M)
    h = jnp.maximum(shift(y[0:mid], 1, has_left)
                    + y[mid:2 * mid]
                    + shift(y[2 * mid:3 * mid], M - 1, has_right)
                    + b3_ref[...], 0.0)

    # --- final conv 1x1 (no activation) --------------------------------------
    o_ref[...] = (mxu(w4_ref, h) + b4_ref[...]).astype(o_ref.dtype)


def small_basic_block(x_nchw, params, *, nb=None):
    """Forward pass. x_nchw: (N, Cin, H, W) float32 (PyTorch layout).
    params: PyTorch-layout conv weights/biases (see init_params)."""
    w1, b1, w2, b2, w3, b3, w4, b4 = params
    N, Cin, H, W = x_nchw.shape
    mid = w1.shape[0]
    Cout = w4.shape[0]

    # Images packed per grid step.  Keep the lane axis a multiple of 128 when
    # the grid splits the batch; otherwise process the whole batch per step
    # (block == full array is always legal).
    if nb is None:
        nb = 1 if (H * W) % 128 == 0 else N
    assert N % nb == 0, "batch must be divisible by nb"
    m_blk = nb * H * W

    # ---- one-time layout / precision prep (outside the kernel) -------------
    f32, bf16 = jnp.float32, jnp.bfloat16
    w1k = w1[:, :, 0, 0].astype(bf16)                                 # (mid, Cin)
    w2k = jnp.transpose(w2[:, :, :, 0], (2, 0, 1)).reshape(3 * mid, mid).astype(bf16)
    w3k = jnp.transpose(w3[:, :, 0, :], (2, 0, 1)).reshape(3 * mid, mid).astype(bf16)
    w4k = w4[:, :, 0, 0].astype(bf16)                                 # (Cout, mid)
    b1k = b1.reshape(mid, 1).astype(f32)
    b2k = b2.reshape(mid, 1).astype(f32)
    b3k = b3.reshape(mid, 1).astype(f32)
    b4k = b4.reshape(Cout, 1).astype(f32)

    # Channels-first with the flattened (n, h, w) axis in lanes.
    x2d = jnp.transpose(x_nchw, (1, 0, 2, 3)).reshape(Cin, N * H * W).astype(bf16)

    def full(a):
        return pl.BlockSpec(a.shape, lambda i: (0, 0))

    out2d = pl.pallas_call(
        functools.partial(small_basic_block_kernel, H=H, W=W),
        out_shape=jax.ShapeDtypeStruct((Cout, N * H * W), jnp.float32),
        grid=(N // nb,),
        in_specs=[
            pl.BlockSpec((Cin, m_blk), lambda i: (0, i)),
            full(w1k), full(b1k), full(w2k), full(b2k),
            full(w3k), full(b3k), full(w4k), full(b4k),
        ],
        out_specs=pl.BlockSpec((Cout, m_blk), lambda i: (0, i)),
        compiler_params=pltpu.CompilerParams(
            dimension_semantics=("parallel",)),   # batch blocks are independent
    )(x2d, w1k, b1k, w2k, b2k, w3k, b3k, w4k, b4k)

    return jnp.transpose(out2d.reshape(Cout, N, H, W), (1, 0, 2, 3))


def init_params(key, ch_in, ch_out, *, random_bias=False):
    """PyTorch-layout params: Kaiming-normal(fan_out, relu) weights, zero
    biases (matching init_weights).  random_bias=True draws small non-zero
    biases so the kernel's bias path is exercised by the correctness check."""
    mid = ch_out // 4
    ks = jax.random.split(key, 8)

    def kaiming(k, shape):
        fan_out = shape[0] * shape[2] * shape[3]
        return jnp.sqrt(2.0 / fan_out) * jax.random.normal(k, shape, jnp.float32)

    def bias(k, n):
        if random_bias:
            return 0.1 * jax.random.normal(k, (n,), jnp.float32)
        return jnp.zeros((n,), jnp.float32)

    w1 = kaiming(ks[0], (mid, ch_in, 1, 1)); b1 = bias(ks[4], mid)
    w2 = kaiming(ks[1], (mid, mid, 3, 1));   b2 = bias(ks[5], mid)
    w3 = kaiming(ks[2], (mid, mid, 1, 3));   b3 = bias(ks[6], mid)
    w4 = kaiming(ks[3], (ch_out, mid, 1, 1)); b4 = bias(ks[7], ch_out)
    return (w1, b1, w2, b2, w3, b3, w4, b4)


def reference_nchw(x, params):
    """Pure-JAX/XLA f32 reference with PyTorch NCHW/OIHW conv semantics."""
    w1, b1, w2, b2, w3, b3, w4, b4 = params
    dn = ("NCHW", "OIHW", "NCHW")

    def conv(h, w, b, pad):
        y = lax.conv_general_dilated(h, w, (1, 1), pad, dimension_numbers=dn)
        return y + b.reshape(1, -1, 1, 1)

    h = jax.nn.relu(conv(x, w1, b1, [(0, 0), (0, 0)]))
    h = jax.nn.relu(conv(h, w2, b2, [(1, 1), (0, 0)]))
    h = jax.nn.relu(conv(h, w3, b3, [(0, 0), (1, 1)]))
    return conv(h, w4, b4, [(0, 0), (0, 0)])


if __name__ == "__main__":
    N, CH_IN, CH_OUT, H, W = 2, 8, 32, 16, 16

    key = jax.random.PRNGKey(0)
    kx, kp = jax.random.split(key)

    x_nchw = jax.random.normal(kx, (N, CH_IN, H, W), jnp.float32)  # PyTorch layout
    # The module's init zeros the biases; use small random ones here so the
    # bias path is actually exercised by the numerical check.
    params = init_params(kp, CH_IN, CH_OUT, random_bias=True)

    out = jax.block_until_ready(small_basic_block(x_nchw, params))
    ref = jax.block_until_ready(reference_nchw(x_nchw, params))

    # bf16 matmul operands (f32 accumulation) => compare against the f32
    # reference with a bf16-level tolerance.
    np.testing.assert_allclose(np.asarray(out), np.asarray(ref),
                               rtol=5e-2, atol=5e-2)
    print("KERNEL_OK")
</pallas_src>

<mosaic_0001>
module attributes {stable_mosaic.version = 11 : i64} {
  func.func @small_basic_block_kernel(%arg0: i32, %arg1: memref<8x256xbf16, #tpu.memory_space<vmem>>, %arg2: memref<8x8xbf16, #tpu.memory_space<vmem>>, %arg3: memref<8x1xf32, #tpu.memory_space<vmem>>, %arg4: memref<24x8xbf16, #tpu.memory_space<vmem>>, %arg5: memref<8x1xf32, #tpu.memory_space<vmem>>, %arg6: memref<24x8xbf16, #tpu.memory_space<vmem>>, %arg7: memref<8x1xf32, #tpu.memory_space<vmem>>, %arg8: memref<32x8xbf16, #tpu.memory_space<vmem>>, %arg9: memref<32x1xf32, #tpu.memory_space<vmem>>, %arg10: memref<32x256xf32, #tpu.memory_space<vmem>>) attributes {dimension_semantics = [#tpu.dimension_semantics<parallel>], iteration_bounds = array<i64: 2>, scalar_prefetch = 0 : i64, scratch_operands = 0 : i64, tpu.core_type = #tpu.core_type<tc>, window_params = [{transform_indices = @transform_0, window_bounds = array<i64: 8, 256>}, {pipeline_mode = #tpu.pipeline_mode<synchronous>, transform_indices = @transform_1, window_bounds = array<i64: 8, 8>}, {pipeline_mode = #tpu.pipeline_mode<synchronous>, transform_indices = @transform_2, window_bounds = array<i64: 8, 1>}, {pipeline_mode = #tpu.pipeline_mode<synchronous>, transform_indices = @transform_3, window_bounds = array<i64: 24, 8>}, {pipeline_mode = #tpu.pipeline_mode<synchronous>, transform_indices = @transform_4, window_bounds = array<i64: 8, 1>}, {pipeline_mode = #tpu.pipeline_mode<synchronous>, transform_indices = @transform_5, window_bounds = array<i64: 24, 8>}, {pipeline_mode = #tpu.pipeline_mode<synchronous>, transform_indices = @transform_6, window_bounds = array<i64: 8, 1>}, {pipeline_mode = #tpu.pipeline_mode<synchronous>, transform_indices = @transform_7, window_bounds = array<i64: 32, 8>}, {pipeline_mode = #tpu.pipeline_mode<synchronous>, transform_indices = @transform_8, window_bounds = array<i64: 32, 1>}, {transform_indices = @transform_9, window_bounds = array<i64: 32, 256>}]} {
    %0 = tpu.iota {dimensions = array<i32: 1>} : vector<1x256xi32>
    %c256_i32 = arith.constant 256 : i32
    %c0_i32 = arith.constant 0 : i32
    %1 = arith.cmpi eq, %c256_i32, %c0_i32 : i32
    %c1_i32 = arith.constant 1 : i32
    %2 = arith.select %1, %c1_i32, %c256_i32 : i32
    %3 = vector.broadcast %2 : i32 to vector<1x256xi32>
    %4 = arith.remsi %0, %3 : vector<1x256xi32>
    %c0_i32_0 = arith.constant 0 : i32
    %5 = vector.broadcast %c0_i32_0 : i32 to vector<1x256xi32>
    %6 = arith.cmpi ne, %4, %5 : vector<1x256xi32>
    %c0_i32_1 = arith.constant 0 : i32
    %7 = vector.broadcast %c0_i32_1 : i32 to vector<1x256xi32>
    %8 = arith.cmpi slt, %4, %7 : vector<1x256xi32>
    %c0_i32_2 = arith.constant 0 : i32
    %9 = arith.cmpi slt, %2, %c0_i32_2 : i32
    %10 = vector.broadcast %9 : i1 to vector<1x256xi1>
    %11 = vector.broadcast %10 : vector<1x256xi1> to vector<1x256xi1>
    %12 = arith.xori %8, %11 : vector<1x256xi1>
    %13 = arith.andi %12, %6 : vector<1x256xi1>
    %14 = vector.broadcast %2 : i32 to vector<1x256xi32>
    %15 = arith.addi %4, %14 : vector<1x256xi32>
    %16 = arith.select %13, %15, %4 : vector<1x256xi1>, vector<1x256xi32>
    %c16_i32 = arith.constant 16 : i32
    %c0_i32_3 = arith.constant 0 : i32
    %17 = arith.cmpi eq, %c16_i32, %c0_i32_3 : i32
    %c1_i32_4 = arith.constant 1 : i32
    %18 = arith.select %17, %c1_i32_4, %c16_i32 : i32
    %19 = vector.broadcast %18 : i32 to vector<1x256xi32>
    %20 = arith.remsi %0, %19 : vector<1x256xi32>
    %c0_i32_5 = arith.constant 0 : i32
    %21 = vector.broadcast %c0_i32_5 : i32 to vector<1x256xi32>
    %22 = arith.cmpi ne, %20, %21 : vector<1x256xi32>
    %c0_i32_6 = arith.constant 0 : i32
    %23 = vector.broadcast %c0_i32_6 : i32 to vector<1x256xi32>
    %24 = arith.cmpi slt, %20, %23 : vector<1x256xi32>
    %c0_i32_7 = arith.constant 0 : i32
    %25 = arith.cmpi slt, %18, %c0_i32_7 : i32
    %26 = vector.broadcast %25 : i1 to vector<1x256xi1>
    %27 = vector.broadcast %26 : vector<1x256xi1> to vector<1x256xi1>
    %28 = arith.xori %24, %27 : vector<1x256xi1>
    %29 = arith.andi %28, %22 : vector<1x256xi1>
    %30 = vector.broadcast %18 : i32 to vector<1x256xi32>
    %31 = arith.addi %20, %30 : vector<1x256xi32>
    %32 = arith.select %29, %31, %20 : vector<1x256xi1>, vector<1x256xi32>
    %c16_i32_8 = arith.constant 16 : i32
    %33 = vector.broadcast %c16_i32_8 : i32 to vector<1x256xi32>
    %34 = arith.cmpi sge, %16, %33 : vector<1x256xi32>
    %c240_i32 = arith.constant 240 : i32
    %35 = vector.broadcast %c240_i32 : i32 to vector<1x256xi32>
    %36 = arith.cmpi slt, %16, %35 : vector<1x256xi32>
    %c1_i32_9 = arith.constant 1 : i32
    %37 = vector.broadcast %c1_i32_9 : i32 to vector<1x256xi32>
    %38 = arith.cmpi sge, %32, %37 : vector<1x256xi32>
    %c15_i32 = arith.constant 15 : i32
    %39 = vector.broadcast %c15_i32 : i32 to vector<1x256xi32>
    %40 = arith.cmpi slt, %32, %39 : vector<1x256xi32>
    %c0 = arith.constant 0 : index
    %c0_10 = arith.constant 0 : index
    %41 = vector.load %arg1[%c0, %c0_10] : memref<8x256xbf16, #tpu.memory_space<vmem>>, vector<8x256xbf16>
    %c0_11 = arith.constant 0 : index
    %c0_12 = arith.constant 0 : index
    %42 = vector.load %arg2[%c0_11, %c0_12] : memref<8x8xbf16, #tpu.memory_space<vmem>>, vector<8x8xbf16>
    %cst = arith.constant dense<0.000000e+00> : vector<8x256xf32>
    %43 = tpu.matmul %42, %41, %cst {dimension_numbers = #tpu.dot_dimension_numbers<[1], [0], [0], [1], [0, 0, 1, 1], [], []>} : vector<8x8xbf16>, vector<8x256xbf16>, vector<8x256xf32> -> vector<8x256xf32>
    %c0_13 = arith.constant 0 : index
    %c0_14 = arith.constant 0 : index
    %44 = vector.load %arg3[%c0_13, %c0_14] : memref<8x1xf32, #tpu.memory_space<vmem>>, vector<8x1xf32>
    %45 = vector.broadcast %44 : vector<8x1xf32> to vector<8x256xf32>
    %46 = arith.addf %43, %45 : vector<8x256xf32>
    %cst_15 = arith.constant 0.000000e+00 : f32
    %47 = vector.broadcast %cst_15 : f32 to vector<8x256xf32>
    %48 = arith.maximumf %46, %47 : vector<8x256xf32>
    %c0_16 = arith.constant 0 : index
    %c0_17 = arith.constant 0 : index
    %49 = vector.load %arg4[%c0_16, %c0_17] : memref<24x8xbf16, #tpu.memory_space<vmem>>, vector<24x8xbf16>
    %50 = arith.truncf %48 : vector<8x256xf32> to vector<8x256xbf16>
    %cst_18 = arith.constant dense<0.000000e+00> : vector<24x256xf32>
    %51 = tpu.matmul %49, %50, %cst_18 {dimension_numbers = #tpu.dot_dimension_numbers<[1], [0], [0], [1], [0, 0, 1, 1], [], []>} : vector<24x8xbf16>, vector<8x256xbf16>, vector<24x256xf32> -> vector<24x256xf32>
    %52 = vector.extract_strided_slice %51 {offsets = [0, 0], sizes = [8, 256], strides = [1, 1]} : vector<24x256xf32> to vector<8x256xf32>
    %c16_i32_19 = arith.constant 16 : i32
    %53 = tpu.dynamic_rotate %52 by %c16_i32_19 dim 1 : vector<8x256xf32>, i32 -> vector<8x256xf32>
    %cst_20 = arith.constant 0.000000e+00 : f32
    %54 = vector.shape_cast %34 : vector<1x256xi1> to vector<1x256xi1>
    %55 = vector.broadcast %54 : vector<1x256xi1> to vector<8x256xi1>
    %56 = vector.broadcast %cst_20 : f32 to vector<8x256xf32>
    %57 = arith.select %55, %53, %56 : vector<8x256xi1>, vector<8x256xf32>
    %58 = vector.extract_strided_slice %51 {offsets = [8, 0], sizes = [8, 256], strides = [1, 1]} : vector<24x256xf32> to vector<8x256xf32>
    %59 = arith.addf %57, %58 : vector<8x256xf32>
    %60 = vector.extract_strided_slice %51 {offsets = [16, 0], sizes = [8, 256], strides = [1, 1]} : vector<24x256xf32> to vector<8x256xf32>
    %c240_i32_21 = arith.constant 240 : i32
    %61 = tpu.dynamic_rotate %60 by %c240_i32_21 dim 1 : vector<8x256xf32>, i32 -> vector<8x256xf32>
    %cst_22 = arith.constant 0.000000e+00 : f32
    %62 = vector.shape_cast %36 : vector<1x256xi1> to vector<1x256xi1>
    %63 = vector.broadcast %62 : vector<1x256xi1> to vector<8x256xi1>
    %64 = vector.broadcast %cst_22 : f32 to vector<8x256xf32>
    %65 = arith.select %63, %61, %64 : vector<8x256xi1>, vector<8x256xf32>
    %66 = arith.addf %59, %65 : vector<8x256xf32>
    %c0_23 = arith.constant 0 : index
    %c0_24 = arith.constant 0 : index
    %67 = vector.load %arg5[%c0_23, %c0_24] : memref<8x1xf32, #tpu.memory_space<vmem>>, vector<8x1xf32>
    %68 = vector.broadcast %67 : vector<8x1xf32> to vector<8x256xf32>
    %69 = arith.addf %66, %68 : vector<8x256xf32>
    %cst_25 = arith.constant 0.000000e+00 : f32
    %70 = vector.broadcast %cst_25 : f32 to vector<8x256xf32>
    %71 = arith.maximumf %69, %70 : vector<8x256xf32>
    %c0_26 = arith.constant 0 : index
    %c0_27 = arith.constant 0 : index
    %72 = vector.load %arg6[%c0_26, %c0_27] : memref<24x8xbf16, #tpu.memory_space<vmem>>, vector<24x8xbf16>
    %73 = arith.truncf %71 : vector<8x256xf32> to vector<8x256xbf16>
    %cst_28 = arith.constant dense<0.000000e+00> : vector<24x256xf32>
    %74 = tpu.matmul %72, %73, %cst_28 {dimension_numbers = #tpu.dot_dimension_numbers<[1], [0], [0], [1], [0, 0, 1, 1], [], []>} : vector<24x8xbf16>, vector<8x256xbf16>, vector<24x256xf32> -> vector<24x256xf32>
    %75 = vector.extract_strided_slice %74 {offsets = [0, 0], sizes = [8, 256], strides = [1, 1]} : vector<24x256xf32> to vector<8x256xf32>
    %c1_i32_29 = arith.constant 1 : i32
    %76 = tpu.dynamic_rotate %75 by %c1_i32_29 dim 1 : vector<8x256xf32>, i32 -> vector<8x256xf32>
    %cst_30 = arith.constant 0.000000e+00 : f32
    %77 = vector.shape_cast %38 : vector<1x256xi1> to vector<1x256xi1>
    %78 = vector.broadcast %77 : vector<1x256xi1> to vector<8x256xi1>
    %79 = vector.broadcast %cst_30 : f32 to vector<8x256xf32>
    %80 = arith.select %78, %76, %79 : vector<8x256xi1>, vector<8x256xf32>
    %81 = vector.extract_strided_slice %74 {offsets = [8, 0], sizes = [8, 256], strides = [1, 1]} : vector<24x256xf32> to vector<8x256xf32>
    %82 = arith.addf %80, %81 : vector<8x256xf32>
    %83 = vector.extract_strided_slice %74 {offsets = [16, 0], sizes = [8, 256], strides = [1, 1]} : vector<24x256xf32> to vector<8x256xf32>
    %c255_i32 = arith.constant 255 : i32
    %84 = tpu.dynamic_rotate %83 by %c255_i32 dim 1 : vector<8x256xf32>, i32 -> vector<8x256xf32>
    %cst_31 = arith.constant 0.000000e+00 : f32
    %85 = vector.shape_cast %40 : vector<1x256xi1> to vector<1x256xi1>
    %86 = vector.broadcast %85 : vector<1x256xi1> to vector<8x256xi1>
    %87 = vector.broadcast %cst_31 : f32 to vector<8x256xf32>
    %88 = arith.select %86, %84, %87 : vector<8x256xi1>, vector<8x256xf32>
    %89 = arith.addf %82, %88 : vector<8x256xf32>
    %c0_32 = arith.constant 0 : index
    %c0_33 = arith.constant 0 : index
    %90 = vector.load %arg7[%c0_32, %c0_33] : memref<8x1xf32, #tpu.memory_space<vmem>>, vector<8x1xf32>
    %91 = vector.broadcast %90 : vector<8x1xf32> to vector<8x256xf32>
    %92 = arith.addf %89, %91 : vector<8x256xf32>
    %cst_34 = arith.constant 0.000000e+00 : f32
    %93 = vector.broadcast %cst_34 : f32 to vector<8x256xf32>
    %94 = arith.maximumf %92, %93 : vector<8x256xf32>
    %c0_35 = arith.constant 0 : index
    %c0_36 = arith.constant 0 : index
    %95 = vector.load %arg8[%c0_35, %c0_36] : memref<32x8xbf16, #tpu.memory_space<vmem>>, vector<32x8xbf16>
    %96 = arith.truncf %94 : vector<8x256xf32> to vector<8x256xbf16>
    %cst_37 = arith.constant dense<0.000000e+00> : vector<32x256xf32>
    %97 = tpu.matmul %95, %96, %cst_37 {dimension_numbers = #tpu.dot_dimension_numbers<[1], [0], [0], [1], [0, 0, 1, 1], [], []>} : vector<32x8xbf16>, vector<8x256xbf16>, vector<32x256xf32> -> vector<32x256xf32>
    %c0_38 = arith.constant 0 : index
    %c0_39 = arith.constant 0 : index
    %98 = vector.load %arg9[%c0_38, %c0_39] : memref<32x1xf32, #tpu.memory_space<vmem>>, vector<32x1xf32>
    %99 = vector.broadcast %98 : vector<32x1xf32> to vector<32x256xf32>
    %100 = arith.addf %97, %99 : vector<32x256xf32>
    %c0_40 = arith.constant 0 : index
    %c0_41 = arith.constant 0 : index
    %101 = vector.load %arg10[%c0_40, %c0_41] : memref<32x256xf32, #tpu.memory_space<vmem>>, vector<32x256xf32>
    tpu.vector_store %arg10[%c0_40, %c0_41], %100 {strides = array<i32>} : memref<32x256xf32, #tpu.memory_space<vmem>>, vector<32x256xf32>,
    return
  }
  func.func @transform_0(%arg0: i32) -> (i32, i32) {
    %c0_i32 = arith.constant 0 : i32
    %c0_i32_0 = arith.constant 0 : i32
    return %c0_i32, %arg0 : i32, i32
  }
  func.func @transform_1(%arg0: i32) -> (i32, i32) {
    %c0_i32 = arith.constant 0 : i32
    %c0_i32_0 = arith.constant 0 : i32
    %c0_i32_1 = arith.constant 0 : i32
    return %c0_i32, %c0_i32_0 : i32, i32
  }
  func.func @transform_2(%arg0: i32) -> (i32, i32) {
    %c0_i32 = arith.constant 0 : i32
    %c0_i32_0 = arith.constant 0 : i32
    %c0_i32_1 = arith.constant 0 : i32
    return %c0_i32, %c0_i32_0 : i32, i32
  }
  func.func @transform_3(%arg0: i32) -> (i32, i32) {
    %c0_i32 = arith.constant 0 : i32
    %c0_i32_0 = arith.constant 0 : i32
    %c0_i32_1 = arith.constant 0 : i32
    return %c0_i32, %c0_i32_0 : i32, i32
  }
  func.func @transform_4(%arg0: i32) -> (i32, i32) {
    %c0_i32 = arith.constant 0 : i32
    %c0_i32_0 = arith.constant 0 : i32
    %c0_i32_1 = arith.constant 0 : i32
    return %c0_i32, %c0_i32_0 : i32, i32
  }
  func.func @transform_5(%arg0: i32) -> (i32, i32) {
    %c0_i32 = arith.constant 0 : i32
    %c0_i32_0 = arith.constant 0 : i32
    %c0_i32_1 = arith.constant 0 : i32
    return %c0_i32, %c0_i32_0 : i32, i32
  }
  func.func @transform_6(%arg0: i32) -> (i32, i32) {
    %c0_i32 = arith.constant 0 : i32
    %c0_i32_0 = arith.constant 0 : i32
    %c0_i32_1 = arith.constant 0 : i32
    return %c0_i32, %c0_i32_0 : i32, i32
  }
  func.func @transform_7(%arg0: i32) -> (i32, i32) {
    %c0_i32 = arith.constant 0 : i32
    %c0_i32_0 = arith.constant 0 : i32
    %c0_i32_1 = arith.constant 0 : i32
    return %c0_i32, %c0_i32_0 : i32, i32
  }
  func.func @transform_8(%arg0: i32) -> (i32, i32) {
    %c0_i32 = arith.constant 0 : i32
    %c0_i32_0 = arith.constant 0 : i32
    %c0_i32_1 = arith.constant 0 : i32
    return %c0_i32, %c0_i32_0 : i32, i32
  }
  func.func @transform_9(%arg0: i32) -> (i32, i32) {
    %c0_i32 = arith.constant 0 : i32
    %c0_i32_0 = arith.constant 0 : i32
    return %c0_i32, %arg0 : i32, i32
  }
}

</mosaic_0001>

<bundles_post_ra>
// kernel: tpu_custom_call.1
= control target key start
LH: loop header
LB: loop body
LE: loop exit
PB: predicated region body
PF: predicated region fallthrough
CT: control target
= control target key end

     0   :  { %14 = vsyncpa [#allocation3], 0  ;;  %s1209_s0 = inlined_call_operand.vmem [shape: bf16[8,512], index: 0, kind: input, shape index: {}]   ;;  %s1210_s1 = inlined_call_operand.vmem [shape: bf16[8,8], index: 1, kind: input, shape index: {}]   ;;  %s1211_s2 = inlined_call_operand.vmem [shape: f32[8,1], index: 2, kind: input, shape index: {}]   ;;  %s1212_s3 = inlined_call_operand.vmem [shape: bf16[24,8], index: 3, kind: input, shape index: {}]   ;;  %s1213_s4 = inlined_call_operand.vmem [shape: f32[8,1], index: 4, kind: input, shape index: {}]   ;;  %s1214_s5 = inlined_call_operand.vmem [shape: bf16[24,8], index: 5, kind: input, shape index: {}]   ;;  %s1215_s6 = inlined_call_operand.vmem [shape: f32[8,1], index: 6, kind: input, shape index: {}]   ;;  %s1216_s7 = inlined_call_operand.vmem [shape: bf16[32,8], index: 7, kind: input, shape index: {}]   ;;  %s1217_s8 = inlined_call_operand.vmem [shape: f32[32,1], index: 8, kind: input, shape index: {}]   ;;  %s1218_s9 = inlined_call_operand.hbm [shape: f32[32,512], index: 9, kind: output, shape index: {}]  }
   0x1   :  { %16 = vsyncpa [#allocation3 + $0x1], 0  ;;  %s1041_s30 = smov 0   ;;  %s1043_s10 = smov 0  }
   0x2   :  { %s1045_s11 = smov 0   ;;  %s1047_s12 = smov 0  }
   0x3 LB: > { %s1062_s13 = sadd.s32 4294967295, %s982_s12   ;;  %s824_s14 = sadd.s32 4294967294, %s982_s12   ;;  %s982_s12 = sphi %s1047_s12, %s1224_s12   ;;  %s978_s11 = sphi %s1045_s11, %s1223_s11   ;;  %s974_s10 = sphi %s1043_s10, %s1222_s10   ;;  %s970_s30 = sphi %s1041_s30, %s1221_s30  }
   0x4   : > { %s1066_s15 = sadd.s32 1, %s982_s12   ;;  %s223_s16 = sadd.s32 1, %s978_s11 }
   0x5   : > { %s220_s17 = ssub.s32 %s982_s12, %s1066_s15  ;;  %p233_p0 = scmp.ne.s32.totalorder %s978_s11, %s974_s10 }
   0x6   : > { %p221_p1 = scmp.eq.s32.totalorder %s220_s17, 0  ;;  %p234_p2 = scmp.eq.s32.totalorder %s1062_s13, 1 }
   0x7   : > { %p239_p3 = scmp.ne.s32.totalorder %s974_s10, %s970_s30  ;;  %p240_p4 = scmp.eq.s32.totalorder %s824_s14, 1 }
   0x8   : > { %s1077_s18 = scalar_select %p221_p1, %s978_s11, %s223_s16  }
   0x9   : > { %p1079_p5 = por %p234_p2, %p233_p0  ;;  %p1083_p6 = por %p240_p4, %p239_p3 }
   0xa   : > { %p827_p7 = scmp.ge.s32.totalorder %s982_s12, 1  ;;  %p291_p8 = scmp.lt.s32.totalorder %s982_s12, 3 }
   0xc   : > { %p292_p9 = pnand %p827_p7, %p291_p8 }
   0xd   : > { %s829_s21 = sshll.u32 (!%p292_p9), %s1062_s13, 1  ;;  %s985_s22 = smov (!%p292_p9), 16  }
   0xe   : > { %295 = sbr.rel (%p292_p9) target bundleno = 878 (0x36e), region = 56  ;;  %p328_p10 = scmp.lt.s32.totalorder (!%p292_p9), %s829_s21, 3 }
   0xf   : > { %s986_s23 = smov (!%p292_p9), 112   ;;  %s987_s14 = smov (!%p292_p9), 1  }
  0x10   : > { %s940_s28 = scalar_lea.hbm (!%p292_p9), %s1218_s9, 128 }
  0x13   : > { %v984_v0 = vmov 0   ;;  %v396_v1 = vld [vmem:[%s1211_s2] sm:$0xff]  ;;  %s1226_s21 = smov (!%p328_p10, %s829_s21), 3  ;;  %vm411_vm0 = vcmask 1043456   ;;  %vm407_vm1 = vcmask 64512   ;;  %v335_v36 = vlaneseq }
  0x14   : > { %917 = vset.pattern.permute.xlu0 %v984_v0  ;;  %918 = vset.pattern.permute.xlu2 %v984_v0  ;;  %s830_s24 = sshll.u32 %s1226_s21, 2  ;;  %v395_v9 = vld [vmem:[%s1210_s1] sm:$0xf]  ;;  %v448_v24 = vld [vmem:[%s1212_s3 + $0x8] sm:$0xf] }
  0x15   : > { %399 = vperm.xlu0 %917, %v396_v1   ;;  %919 = vset.pattern.permute.xlu1 %v984_v0  ;;  %s331_s27 = scalar_lea.vmem %s1209_s0, %s830_s24  ;;  %v866_v21 = vld [vmem:[%s1212_s3] sm:$0xff]  ;;  %v456_v25 = vunpack.c.l.b16 %v448_v24  ;;  %v1120_v37 = vand.u32 127, %v335_v36  ;;  %v549_v1 = vld [vmem:[%s1214_s5 + $0x8] sm:$0xf]  ;;  %s988_s24 = smov 127  }
  0x16   : > { %v394_v2 = vld [vmem:[%s331_s27] sm:$0xff]  ;;  %s870_s27 = sshll.u32 %s1062_s13, 4 }
  0x17   : > { %v403_v3 = vunpack.c.l.b16 %v394_v2  ;;  %v404_v4 = vunpack.c.h.b16 %v394_v2  ;;  %v458_v26 = vpack.c.b16 %v456_v25, %v456_v25  ;;  %v537_v33 = vld [vmem:[%s1213_s4] sm:$0xff]  ;;  %v342_v38 = vand.u32 255, %v1120_v37 }
  0x18   : > { %vm511_vm2 = vcmp.lt.s32.totalorder %v1120_v37, 16  ;;  %v1125_v42 = vadd.s32 128, %v1120_v37  ;;  %vm526_vm4 = vcmp.lt.s32.totalorder %v1120_v37, 112  ;;  %v867_v63 = vld [vmem:[%s1214_s5] sm:$0xff]  ;;  %v557_v2 = vunpack.c.l.b16 %v549_v1 }
  0x19   : > { %v405_v5 = vpack.c.b16 %v403_v3, %v403_v3  ;;  %v406_v6 = vpack.c.b16 %v404_v4, %v404_v4  ;;  %vm386_vm3 = vcmp.ge.s32.totalorder %v342_v38, 16  ;;  %vm612_vm6 = vcmp.lt.s32.totalorder %v1120_v37, 1 }
  0x1a   : > { %v349_v44 = vand.u32 255, %v1125_v42  ;;  %v559_v3 = vpack.c.b16 %v557_v2, %v557_v2  ;;  %vm627_vm9 = vcmp.lt.s32.totalorder %v1120_v37, 127 }
  0x1b   : > { %v413_v7 = vsel %vm411_vm0, %v405_v5, 0  ;;  %v416_v8 = vsel %vm411_vm0, %v406_v6, 0  ;;  %v638_v6 = vld [vmem:[%s1215_s6] sm:$0xff] }
  0x1c   : > { %425 = vmatpush.bf16.msra.mxu0 %v413_v7  ;;  %438 = vmatpush.bf16.msra.mxu1 %v416_v8  ;;  %vm389_vm5 = vcmp.lt.s32.totalorder %v349_v44, 240  ;;  %v868_v44 = vld [vmem:[%s1216_s7] sm:$0xff] }
  0x1f   : > { %831 = vmatmul.msk.bf16.vlgmr.msra.gmra.mxu0 %vm407_vm1, %v395_v9  ;;  %832 = vmatmul.msk.bf16.vlgmr.msra.gmra.mxu1 %vm407_vm1, %v395_v9  ;;  %v656_v9 = vld [vmem:[%s1217_s8 + $0x10] sm:$0xff] }
  0x87   : > { %v400_v10 = vpop.permute.xlu0 %399 }
  0x9c   : > { %v427_v11 = vpop.f32.mrf.mxu0  ;;  %v440_v12 = vpop.f32.mrf.mxu1 }
  0x9d   : > { %v428_v13 = vadd.f32 %v427_v11, %v400_v10  ;;  %v441_v14 = vadd.f32 %v440_v12, %v400_v10  ;;  %v654_v12 = vld [vmem:[%s1217_s8] sm:$0xff] }
  0x9f   : > { %v444_v15 = vmax.f32 %v428_v13, 0.0  ;;  %v445_v16 = vmax.f32 %v441_v14, 0.0  ;;  %v655_v13 = vld [vmem:[%s1217_s8 + $0x8] sm:$0xff] }
  0xa1   : > { %v449_v17 = vpack.c.bf16 %v444_v15, %v444_v15  ;;  %v450_v18 = vpack.c.bf16 %v445_v16, %v445_v16  ;;  %v657_v16 = vld [vmem:[%s1217_s8 + $0x18] sm:$0xff] }
  0xa3   : > { %v466_v19 = vsel %vm411_vm0, %v449_v17, 0  ;;  %v469_v20 = vsel %vm411_vm0, %v450_v18, 0  ;;  %v366_v17 = vand.u32 15, %v1120_v37  ;;  %v373_v18 = vand.u32 15, %v1125_v42 }
  0xa4   : > { %v429_v22 = vpop.f32.mrf.mxu0  ;;  %v442_v23 = vpop.f32.mrf.mxu1  ;;  %478 = vmatpush.bf16.msra.mxu2 %v466_v19  ;;  %496 = vmatpush.bf16.msra.mxu3 %v469_v20 }
  0xa5   : > { %vm390_vm7 = vcmp.ge.s32.totalorder %v366_v17, 1  ;;  %vm391_vm8 = vcmp.ge.s32.totalorder %v373_v18, 1  ;;  %vm392_vm10 = vcmp.lt.s32.totalorder %v366_v17, 15  ;;  %vm393_vm11 = vcmp.lt.s32.totalorder %v373_v18, 15 }
  0xa7   : > { %837 = vmatmul.msk.bf16.vlgmr.msra.gmra.mxu2 %vm407_vm1, %v866_v21  ;;  %839 = vmatmul.msk.bf16.vlgmr.msra.gmra.mxu3 %vm407_vm1, %v866_v21 }
  0xb7   : > { %838 = vmatmul.msk.bf16.gmra.mxu2 %vm407_vm1, %v458_v26  ;;  %840 = vmatmul.msk.bf16.gmra.mxu3 %vm407_vm1, %v458_v26 }
 0x12a   : > { %v480_v27 = vpop.f32.mrf.mxu2  ;;  %v498_v28 = vpop.f32.mrf.mxu3 }
 0x12b   : > { %509 = vrot.lane.b32.xlu1 %v498_v28, %s985_s22  ;;  %507 = vrot.lane.b32.xlu0 %v480_v27, %s985_s22 }
 0x132   : > { %v482_v29 = vpop.f32.mrf.mxu2  ;;  %v500_v30 = vpop.f32.mrf.mxu3 }
 0x13a   : > { %v485_v31 = vpop.f32.mrf.mxu2  ;;  %v503_v32 = vpop.f32.mrf.mxu3 }
 0x13b   : > { %522 = vrot.lane.b32.xlu1 %v485_v31, %s986_s23  ;;  %524 = vrot.lane.b32.xlu2 %v503_v32, %s986_s23 }
 0x142   : > { %v487_v34 = vpop.f32.mrf.mxu2  ;;  %v505_v35 = vpop.f32.mrf.mxu3 }
 0x143   : > { %540 = vperm.xlu2 %918, %v537_v33  }
 0x195   : > { %v525_v39 = vpop.permute.xlu2 %524 }
 0x19d   : > { %v510_v40 = vpop.permute.xlu1 %509  ;;  %v508_v41 = vpop.permute.xlu0 %507 }
 0x19e   : > { %v513_v43 = vsel %vm511_vm2, %v510_v40, %v508_v41  ;;  %v512_v46 = vsel %vm511_vm2, %v508_v41, %v510_v40  ;;  %v541_v52 = vpop.permute.xlu2 %540 }
 0x19f   : > { %v518_v45 = vsel %vm386_vm3, %v513_v43, 0.0  ;;  %v521_v49 = vadd.f32 %v512_v46, %v500_v30 }
 0x1a0   : > { %v520_v47 = vadd.f32 %v518_v45, %v482_v29  ;;  %v869_v45 = vld [vmem:[%s1216_s7 + $0x8] sm:$0xff] }
 0x1ad   : > { %v523_v48 = vpop.permute.xlu1 %522 }
 0x1ae   : > { %v527_v50 = vsel %vm526_vm4, %v523_v48, %v525_v39  ;;  %v528_v51 = vsel %vm526_vm4, %v525_v39, %v523_v48 }
 0x1af   : > { %v534_v53 = vsel %vm389_vm5, %v528_v51, 0.0  ;;  %v535_v54 = vadd.f32 %v527_v50, %v520_v47 }
 0x1b0   : > { %v536_v55 = vadd.f32 %v534_v53, %v521_v49 }
 0x1b1   : > { %v543_v56 = vadd.f32 %v541_v52, %v535_v54 }
 0x1b2   : > { %v544_v57 = vadd.f32 %v541_v52, %v536_v55 }
 0x1b3   : > { %v545_v58 = vmax.f32 %v543_v56, 0.0 }
 0x1b4   : > { %v546_v59 = vmax.f32 %v544_v57, 0.0 }
 0x1b5   : > { %v550_v60 = vpack.c.bf16 %v545_v58, %v545_v58 }
 0x1b6   : > { %v551_v61 = vpack.c.bf16 %v546_v59, %v546_v59 }
 0x1b7   : > { %v567_v62 = vsel %vm411_vm0, %v550_v60, 0 }
 0x1b8   : > { %579 = vmatpush.bf16.msrb.mxu0 %v567_v62  ;;  %v570_v0 = vsel %vm411_vm0, %v551_v61, 0 }
 0x1b9   : > { %597 = vmatpush.bf16.msrb.mxu1 %v570_v0 }
 0x1bb   : > { %845 = vmatmul.msk.bf16.vlgmr.msrb.gmra.mxu0 %vm407_vm1, %v867_v63 }
 0x1bc   : > { %847 = vmatmul.msk.bf16.vlgmr.msrb.gmra.mxu1 %vm407_vm1, %v867_v63 }
 0x1cb   : > { %846 = vmatmul.msk.bf16.gmra.mxu0 %vm407_vm1, %v559_v3 }
 0x1cc   : > { %848 = vmatmul.msk.bf16.gmra.mxu1 %vm407_vm1, %v559_v3 }
 0x238   : > { %v581_v4 = vpop.f32.mrf.mxu0 }
 0x239   : > { %v599_v5 = vpop.f32.mrf.mxu1  ;;  %608 = vrot.lane.b32.xlu0 %v581_v4, %s987_s14 }
 0x23a   : > { %610 = vrot.lane.b32.xlu1 %v599_v5, %s987_s14  ;;  %s758_s14 = scalar_lea.hbm %s1218_s9, %s870_s27 }
 0x23b   : > { %s761_s17 = sshll.u32 %s758_s14, 4  ;;  %s762_s17 = int_to_ptr.hbm [resolvable:$true] %s761_s17 }
 0x23c   : > { %s934_s21 = sshra.s32 %s762_s17, 4  ;;  %s935_s21 = int_to_ptr.hbm [resolvable:$true] %s934_s21 }
 0x23d   : > { %s936_s23 = scalar_lea.hbm %s935_s21, 64  ;;  %p941_p0 = scmp.lt.s32.totalorder %s935_s21, %s1218_s9 }
 0x23e   : > { %p937_p11 = scmp.ne.s32.totalorder %s935_s21, %s936_s23  ;;  %p942_p1 = scmp.lt.s32.totalorder %s940_s28, %s936_s23 }
 0x240   : > { %v583_v7 = vpop.f32.mrf.mxu0  ;;  %p938_p12 = pnand %p937_p11, %p1079_p5  ;;  %p943_p2 = por %p942_p1, %p941_p0 }
 0x241   : > { %v601_v8 = vpop.f32.mrf.mxu1 }
 0x242   : > { %641 = vperm.xlu1 %919, %v638_v6   ;;  %p939_p13 = pneg %p938_p12 }
 0x244   : > { %p944_p3 = pnand %p943_p2, %p939_p13 }
 0x248   : > { %v586_v10 = vpop.f32.mrf.mxu0 }
 0x249   : > { %v604_v11 = vpop.f32.mrf.mxu1  ;;  %623 = vrot.lane.b32.xlu2 %v586_v10, %s988_s24 }
 0x24a   : > { %625 = vrot.lane.b32.xlu0 %v604_v11, %s988_s24  ;;  %670 = vperm.xlu1 %919, %v656_v9   ;;  %s324_s24 = sand.u32 1, %s974_s10  }
 0x24b   : > { %s828_s25 = sshll.u32 %s324_s24, 6  ;;  %s747_s13 = scalar_lea.sflag [#allocation3], %s324_s24 }
 0x24c   : > { %s326_s26 = scalar_lea.vmem [#allocation2], %s828_s25 }
 0x24d   : > { %s759_s16 = sshll.u32 %s326_s26, 4  ;;  %s760_s16 = int_to_ptr.vmem [resolvable:$true] %s759_s16 }
 0x250   : > { %v588_v14 = vpop.f32.mrf.mxu0 }
 0x251   : > { %v606_v15 = vpop.f32.mrf.mxu1  ;;  %660 = vperm.xlu2 %918, %v654_v12  }
 0x252   : > { %665 = vperm.xlu0 %917, %v655_v13  }
 0x259   : > { %675 = vperm.xlu2 %918, %v657_v16  }
 0x2a3   : > { %v624_v25 = vpop.permute.xlu2 %623 }
 0x2ab   : > { %v609_v20 = vpop.permute.xlu0 %608  ;;  %v661_v46 = vpop.permute.xlu2 %660 }
 0x2ac   : > { %v611_v19 = vpop.permute.xlu1 %610 }
 0x2ad   : > { %v613_v21 = vsel %vm612_vm6, %v609_v20, %v611_v19  ;;  %v614_v22 = vsel %vm612_vm6, %v611_v19, %v609_v20 }
 0x2ae   : > { %v619_v23 = vsel %vm390_vm7, %v614_v22, 0.0  ;;  %v620_v24 = vsel %vm391_vm8, %v613_v21, 0.0 }
 0x2af   : > { %v621_v27 = vadd.f32 %v619_v23, %v583_v7  ;;  %v622_v28 = vadd.f32 %v620_v24, %v601_v8 }
 0x2b3   : > { %v676_v61 = vpop.permute.xlu2 %675 }
 0x2b4   : > { %v642_v35 = vpop.permute.xlu1 %641 }
 0x2bc   : > { %v626_v26 = vpop.permute.xlu0 %625  ;;  %v671_v56 = vpop.permute.xlu1 %670 }
 0x2bd   : > { %v628_v29 = vsel %vm627_vm9, %v624_v25, %v626_v26  ;;  %v629_v30 = vsel %vm627_vm9, %v626_v26, %v624_v25 }
 0x2be   : > { %v634_v31 = vsel %vm392_vm10, %v628_v29, 0.0  ;;  %v635_v32 = vsel %vm393_vm11, %v629_v30, 0.0 }
 0x2bf   : > { %v636_v33 = vadd.f32 %v634_v31, %v621_v27  ;;  %v637_v34 = vadd.f32 %v635_v32, %v622_v28 }
 0x2c1   : > { %v644_v36 = vadd.f32 %v642_v35, %v636_v33  ;;  %v645_v38 = vadd.f32 %v642_v35, %v637_v34 }
 0x2c3   : > { %v646_v39 = vmax.f32 %v644_v36, 0.0  ;;  %v647_v40 = vmax.f32 %v645_v38, 0.0 }
 0x2c4   : > { %v666_v51 = vpop.permute.xlu0 %665 }
 0x2c5   : > { %v652_v37 = vpack.c.bf16 %v646_v39, %v646_v39  ;;  %v653_v41 = vpack.c.bf16 %v647_v40, %v647_v40 }
 0x2c7   : > { %v695_v42 = vsel %vm411_vm0, %v652_v37, 0  ;;  %v698_v43 = vsel %vm411_vm0, %v653_v41, 0 }
 0x2c8   : > { %707 = vmatpush.bf16.msrb.mxu2 %v695_v42  ;;  %726 = vmatpush.bf16.msrb.mxu3 %v698_v43 }
 0x2cb   : > { %857 = vmatmul.msk.bf16.vlgmr.msrb.gmra.mxu2 %vm407_vm1, %v868_v44  ;;  %859 = vmatmul.msk.bf16.vlgmr.msrb.gmra.mxu3 %vm407_vm1, %v868_v44 }
 0x2db   : > { %858 = vmatmul.msk.bf16.gmra.mxu2 %vm407_vm1, %v869_v45  ;;  %860 = vmatmul.msk.bf16.gmra.mxu3 %vm407_vm1, %v869_v45 }
 0x34e   : > { %v709_v47 = vpop.f32.mrf.mxu2  ;;  %v728_v48 = vpop.f32.mrf.mxu3 }
 0x34f   : > { %v710_v49 = vadd.f32 %v709_v47, %v661_v46  ;;  %v729_v50 = vadd.f32 %v728_v48, %v661_v46 }
 0x351   : > { %738 = vst [vmem:[%s326_s26] sm:$0xff] %v710_v49 }
 0x352   : > { %739 = vst [vmem:[%s326_s26 + $0x8] sm:$0xff] %v729_v50 }
 0x356   : > { %v711_v52 = vpop.f32.mrf.mxu2  ;;  %v730_v53 = vpop.f32.mrf.mxu3 }
 0x357   : > { %v712_v54 = vadd.f32 %v711_v52, %v666_v51  ;;  %v731_v55 = vadd.f32 %v730_v53, %v666_v51 }
 0x359   : > { %740 = vst [vmem:[%s326_s26 + $0x10] sm:$0xff] %v712_v54 }
 0x35a   : > { %741 = vst [vmem:[%s326_s26 + $0x18] sm:$0xff] %v731_v55 }
 0x35e   : > { %v714_v57 = vpop.f32.mrf.mxu2  ;;  %v733_v58 = vpop.f32.mrf.mxu3 }
 0x35f   : > { %v715_v59 = vadd.f32 %v714_v57, %v671_v56  ;;  %v734_v60 = vadd.f32 %v733_v58, %v671_v56 }
 0x361   : > { %742 = vst [vmem:[%s326_s26 + $0x20] sm:$0xff] %v715_v59 }
 0x362   : > { %743 = vst [vmem:[%s326_s26 + $0x28] sm:$0xff] %v734_v60 }
 0x366   : > { %v716_v62 = vpop.f32.mrf.mxu2  ;;  %v735_v63 = vpop.f32.mrf.mxu3 }
 0x367   : > { %v717_v0 = vadd.f32 %v716_v62, %v676_v61  ;;  %v736_v1 = vadd.f32 %v735_v63, %v676_v61 }
 0x369   : > { %744 = vst [vmem:[%s326_s26 + $0x30] sm:$0xff] %v717_v0 }
 0x36a   : > { %745 = vst [vmem:[%s326_s26 + $0x38] sm:$0xff] %v736_v1 }
 0x36b   : > { %947 = shalt.err (!%p944_p3)
}
 0x36c   : > { %s989_s24 = smov 256   ;;  %s990_s26 = smov 512  }
 0x36d   : > { %871 = dma.vmem_to_hbm [thread:$0]  (%p1079_p5), %s760_s16, 1024, %s762_s17, %s747_s13, %s989_s24, %s990_s26, %s985_s22  }
 0x36e PF: > { %p877_p4 = scmp.ge.s32.totalorder %s982_s12, 2  ;;  %s776_s25 = sand.u32 1, %s970_s30  }
 0x36f   : > { %s777_s21 = scalar_lea.sflag [#allocation3], %s776_s25 }
 0x370   : > { %p874_p7 = pnand %p877_p4, %p1083_p6 }
 0x372   : > { %p875_p8 = pneg %p874_p7 }
 0x374   : > { %965 = dma.done.wait (%p875_p8), %s777_s21, 1024  }
 0x375   : > { %967 = vsyncadd (%p875_p8), %s777_s21, 4294966272  ;;  %p19_p9 = scmp.ge.s32.totalorder %s1066_s15, 4   ;;  %s1221_s30 = smov %s974_s10 }
 0x376   : > { %s1222_s10 = smov %s978_s11  ;;  %s1223_s11 = smov %s1077_s18 }
 0x377   : > { %s1224_s12 = smov %s1066_s15  ;;  %21 = sbr.rel (!%p19_p9) target bundleno = 3 (0x3), region = 91 }
 0x37c   :  { %783 = vsyncpa [#allocation3], 1 }
 0x37d   :  { %785 = vsyncpa [#allocation3 + $0x1], 1 }

</bundles_post_ra>
